<compile_context>
chip_gen: v5e
topology: v5e:2x2
jax: 0.10.0
libtpu: 0.0.40
codegen_flags: <defaults>
</compile_context>

<pallas_src>
import numpy as np
import jax
import jax.numpy as jnp
from jax.experimental import pallas as pl
from jax.experimental.pallas import tpu as pltpu


# ---------------------------------------------------------------------------
# Static layout constants
# ---------------------------------------------------------------------------
S = 64            # lanes reserved per sample (>= seq length 32 + max tap shift 9)
WB_ROWS = 136     # conv rows 0..127 (8-aligned starts) + fc rows 128..135
WB_COLS = 128     # lane-aligned packed weight buffer

# Per conv layer: (row0 in packed buffer, padded out-rows, lane tap shifts)
CONV_LAYERS = (
    (0,    8, (0, 1, 2)),   # conv1: 2->4  (rows padded to 8), k=3
    (8,    8, (0, 1, 2)),   # conv2: 4->8, k=3
    (16,  16, (0, 1, 2)),   # conv3: 8->16, k=3
    (32,  32, (0, 3)),      # conv4: 16->32, k=2, input at lane stride 3
    (64,  64, (0, 9)),      # conv5: 32->64, k=2, input at lane stride 9
)
FC_ROW0 = 128               # fc occupies rows 128..135 (only row 128 is real)


# ---------------------------------------------------------------------------
# Pallas kernel: whole forward pass, batch folded into lanes.
# ---------------------------------------------------------------------------
def cnn_kernel(x_ref, wb_ref, o_ref):
    Wl = x_ref.shape[1]                       # B * S lanes
    ones8 = jnp.ones((8, Wl), jnp.float32)    # carries the bias through the MXU

    def sh(y, t):
        # result[:, j] = y[:, (j + t) % Wl]; wraparound only lands in slack lanes.
        return pltpu.roll(y, shift=Wl - t, axis=1)

    def conv(y, row0, rows_out, taps):
        # im2col as a register value: 8-aligned rolled blocks + ones block (bias).
        blocks = [y if t == 0 else sh(y, t) for t in taps]
        xcol = jnp.concatenate(blocks + [ones8], axis=0)
        w = wb_ref[row0:row0 + rows_out, 0:xcol.shape[0]]
        return jnp.dot(w, xcol, preferred_element_type=jnp.float32)

    def relu(v):
        return jnp.maximum(v, 0.0)

    y = relu(conv(x_ref[...], *CONV_LAYERS[0]))       # conv1 + ReLU   (8,  Wl)
    y = relu(conv(y, *CONV_LAYERS[1]))                # conv2 + ReLU   (8,  Wl)
    y = conv(y, *CONV_LAYERS[2])                      # conv3          (16, Wl)
    y = relu(y + sh(y, 1) + sh(y, 2))                 # AvgPool3 (sum; /3 folded into conv4 w) + ReLU
    y = conv(y, *CONV_LAYERS[3])                      # conv4          (32, Wl), valid at stride-3 lanes
    y = relu(y + sh(y, 3) + sh(y, 6))                 # AvgPool3 (sum; /3 folded into conv5 w) + ReLU
    y = relu(conv(y, *CONV_LAYERS[4]))                # conv5 + ReLU   (64, Wl), valid at lane b*S

    logits = conv(y, FC_ROW0, 8, (0,))                # fc + bias (row 0 valid)  (8, Wl)
    o_ref[...] = jax.nn.sigmoid(logits)               # prob for sample b at [0, b*S]


# ---------------------------------------------------------------------------
# One-time host-side parameter packing (kept OUT of the jitted hot path)
# ---------------------------------------------------------------------------
def pack_params(params):
    """Pack all conv/fc weights+biases into one (136, 128) f32 buffer.

    Column layout per conv (tap ti, in-channel c): col ti*cin_pad + c.
    Bias column = k*cin_pad (first column of the all-ones block).
    conv4/conv5 weights are pre-scaled by 1/3 (folds the AvgPool1d(3) average).
    """
    p = [(np.asarray(w, np.float32), np.asarray(b, np.float32)) for (w, b) in params]
    (w1, b1), (w2, b2), (w3, b3), (w4, b4), (w5, b5), (fcw, fcb) = p

    wb = np.zeros((WB_ROWS, WB_COLS), np.float32)

    def put(row0, cin_pad, w, b, scale):
        cout, cin, k = w.shape
        for ti in range(k):
            wb[row0:row0 + cout, ti * cin_pad:ti * cin_pad + cin] = w[:, :, ti] * scale
        wb[row0:row0 + cout, k * cin_pad] = b          # bias (unscaled)

    put(0,   8,  w1, b1, 1.0)
    put(8,   8,  w2, b2, 1.0)
    put(16,  8,  w3, b3, 1.0)
    put(32, 16,  w4, b4, 1.0 / 3.0)   # fold AvgPool1d(3) after conv3
    put(64, 32,  w5, b5, 1.0 / 3.0)   # fold AvgPool1d(3) after conv4

    wb[FC_ROW0, 0:64] = fcw.reshape(64)
    wb[FC_ROW0, 64] = fcb.reshape(())
    return jnp.asarray(wb)


# ---------------------------------------------------------------------------
# Jitted forward: input layout transform + pallas_call (weights pre-packed)
# ---------------------------------------------------------------------------
@jax.jit
def cnn_forward(x, wb):
    B, Cin, L = x.shape
    assert Cin == 2 and L == 32, "architecture requires (B, 2, 32) input"
    Wl = B * S

    # (B, 2, 32) -> (8, B*S): channels padded to 8 rows, 64 lanes per sample.
    xp = jnp.pad(x.astype(jnp.float32), ((0, 0), (0, 8 - Cin), (0, S - L)))
    x2d = jnp.transpose(xp, (1, 0, 2)).reshape(8, Wl)

    vmem = pl.BlockSpec(memory_space=pltpu.MemorySpace.VMEM)
    out = pl.pallas_call(
        cnn_kernel,
        out_shape=jax.ShapeDtypeStruct((8, Wl), jnp.float32),
        in_specs=[vmem, vmem],
        out_specs=vmem,
    )(x2d, wb)

    # Per-sample probability sits at row 0, lane b*S; matches torch `.squeeze()` -> (B,)
    return out[0, 0:Wl:S]


# ---------------------------------------------------------------------------
# Pure-JAX reference (for correctness check only)
# ---------------------------------------------------------------------------
def ref_forward(x, params):
    (w1, b1), (w2, b2), (w3, b3), (w4, b4), (w5, b5), (fcw, fcb) = params

    def conv1d(x, w, b):
        y = jax.lax.conv_general_dilated(
            x, w, window_strides=(1,), padding='VALID',
            dimension_numbers=('NCH', 'OIH', 'NCH'))
        return y + b[None, :, None]

    def avgpool(x, k=3):
        B, C, L = x.shape
        Lo = L // k
        return x[..., :Lo * k].reshape(B, C, Lo, k).mean(-1)

    relu = jax.nn.relu
    y = relu(conv1d(x, w1, b1))
    y = relu(conv1d(y, w2, b2))
    y = relu(avgpool(conv1d(y, w3, b3)))
    y = relu(avgpool(conv1d(y, w4, b4)))
    y = relu(conv1d(y, w5, b5))
    y = y.reshape(y.shape[0], -1)
    y = jax.nn.sigmoid(y @ fcw.T + fcb)
    return jnp.squeeze(y)


# ---------------------------------------------------------------------------
# Deterministic parameter init (PyTorch-style uniform bounds)
# ---------------------------------------------------------------------------
def init_params(key):
    def uinit(k, shape, fan_in):
        bound = 1.0 / jnp.sqrt(jnp.float32(fan_in))
        return jax.random.uniform(k, shape, jnp.float32, -bound, bound)

    keys = jax.random.split(key, 12)
    conv_shapes = [(4, 2, 3), (8, 4, 3), (16, 8, 3), (32, 16, 2), (64, 32, 2)]
    params = []
    ki = 0
    for (co, ci, kk) in conv_shapes:
        fan_in = ci * kk
        w = uinit(keys[ki], (co, ci, kk), fan_in); ki += 1
        b = uinit(keys[ki], (co,), fan_in); ki += 1
        params.append((w, b))
    fcw = uinit(keys[ki], (1, 64), 64); ki += 1
    fcb = uinit(keys[ki], (1,), 64); ki += 1
    params.append((fcw, fcb))
    return tuple(params)


if __name__ == "__main__":
    key = jax.random.PRNGKey(0)
    pkey, xkey = jax.random.split(key)
    params = init_params(pkey)

    # Pack once, outside the per-call path (perf feedback #2).
    wb = pack_params(params)

    # Input: batch=2, channels=2, sequence length=32 (L=32 is required so the
    # final conv output flattens to exactly 64 features).
    x = jax.random.normal(xkey, (2, 2, 32), jnp.float32)

    out = cnn_forward(x, wb)
    out = jax.block_until_ready(out)

    ref = ref_forward(x, params)
    assert out.shape == ref.shape == (2,)
    assert jnp.allclose(out, ref, atol=2e-5, rtol=1e-4), (out, ref)

    print("KERNEL_OK")
</pallas_src>

<mosaic_0001>
module attributes {stable_mosaic.version = 11 : i64} {
  func.func @cnn_kernel(%arg0: memref<8x128xf32, #tpu.memory_space<vmem>>, %arg1: memref<136x128xf32, #tpu.memory_space<vmem>>, %arg2: memref<8x128xf32, #tpu.memory_space<vmem>>) attributes {dimension_semantics = [], scalar_prefetch = 0 : i64, scratch_operands = 0 : i64, tpu.core_type = #tpu.core_type<tc>} {
    %cst = arith.constant 1.000000e+00 : f32
    %0 = vector.broadcast %cst : f32 to vector<8x128xf32>
    %c0 = arith.constant 0 : index
    %c0_0 = arith.constant 0 : index
    %1 = vector.load %arg0[%c0, %c0_0] : memref<8x128xf32, #tpu.memory_space<vmem>>, vector<8x128xf32>
    %c127_i32 = arith.constant 127 : i32
    %2 = tpu.dynamic_rotate %1 by %c127_i32 dim 1 : vector<8x128xf32>, i32 -> vector<8x128xf32>
    %c126_i32 = arith.constant 126 : i32
    %3 = tpu.dynamic_rotate %1 by %c126_i32 dim 1 : vector<8x128xf32>, i32 -> vector<8x128xf32>
    %4 = tpu.concatenate %1, %2, %3, %0 in 0 : vector<8x128xf32>, vector<8x128xf32>, vector<8x128xf32>, vector<8x128xf32> -> vector<32x128xf32>
    %c0_1 = arith.constant 0 : index
    %c0_2 = arith.constant 0 : index
    %5 = vector.load %arg1[%c0_1, %c0_2] : memref<136x128xf32, #tpu.memory_space<vmem>>, vector<8x32xf32>
    %cst_3 = arith.constant dense<0.000000e+00> : vector<8x128xf32>
    %6 = tpu.matmul %5, %4, %cst_3 {dimension_numbers = #tpu.dot_dimension_numbers<[1], [0], [0], [1], [0, 0, 1, 1], [], []>} : vector<8x32xf32>, vector<32x128xf32>, vector<8x128xf32> -> vector<8x128xf32>
    %cst_4 = arith.constant 0.000000e+00 : f32
    %7 = vector.broadcast %cst_4 : f32 to vector<8x128xf32>
    %8 = arith.maximumf %6, %7 : vector<8x128xf32>
    %c127_i32_5 = arith.constant 127 : i32
    %9 = tpu.dynamic_rotate %8 by %c127_i32_5 dim 1 : vector<8x128xf32>, i32 -> vector<8x128xf32>
    %c126_i32_6 = arith.constant 126 : i32
    %10 = tpu.dynamic_rotate %8 by %c126_i32_6 dim 1 : vector<8x128xf32>, i32 -> vector<8x128xf32>
    %11 = tpu.concatenate %8, %9, %10, %0 in 0 : vector<8x128xf32>, vector<8x128xf32>, vector<8x128xf32>, vector<8x128xf32> -> vector<32x128xf32>
    %c8 = arith.constant 8 : index
    %c0_7 = arith.constant 0 : index
    %12 = vector.load %arg1[%c8, %c0_7] : memref<136x128xf32, #tpu.memory_space<vmem>>, vector<8x32xf32>
    %cst_8 = arith.constant dense<0.000000e+00> : vector<8x128xf32>
    %13 = tpu.matmul %12, %11, %cst_8 {dimension_numbers = #tpu.dot_dimension_numbers<[1], [0], [0], [1], [0, 0, 1, 1], [], []>} : vector<8x32xf32>, vector<32x128xf32>, vector<8x128xf32> -> vector<8x128xf32>
    %cst_9 = arith.constant 0.000000e+00 : f32
    %14 = vector.broadcast %cst_9 : f32 to vector<8x128xf32>
    %15 = arith.maximumf %13, %14 : vector<8x128xf32>
    %c127_i32_10 = arith.constant 127 : i32
    %16 = tpu.dynamic_rotate %15 by %c127_i32_10 dim 1 : vector<8x128xf32>, i32 -> vector<8x128xf32>
    %c126_i32_11 = arith.constant 126 : i32
    %17 = tpu.dynamic_rotate %15 by %c126_i32_11 dim 1 : vector<8x128xf32>, i32 -> vector<8x128xf32>
    %18 = tpu.concatenate %15, %16, %17, %0 in 0 : vector<8x128xf32>, vector<8x128xf32>, vector<8x128xf32>, vector<8x128xf32> -> vector<32x128xf32>
    %c16 = arith.constant 16 : index
    %c0_12 = arith.constant 0 : index
    %19 = vector.load %arg1[%c16, %c0_12] : memref<136x128xf32, #tpu.memory_space<vmem>>, vector<16x32xf32>
    %cst_13 = arith.constant dense<0.000000e+00> : vector<16x128xf32>
    %20 = tpu.matmul %19, %18, %cst_13 {dimension_numbers = #tpu.dot_dimension_numbers<[1], [0], [0], [1], [0, 0, 1, 1], [], []>} : vector<16x32xf32>, vector<32x128xf32>, vector<16x128xf32> -> vector<16x128xf32>
    %c127_i32_14 = arith.constant 127 : i32
    %21 = tpu.dynamic_rotate %20 by %c127_i32_14 dim 1 : vector<16x128xf32>, i32 -> vector<16x128xf32>
    %22 = arith.addf %20, %21 : vector<16x128xf32>
    %c126_i32_15 = arith.constant 126 : i32
    %23 = tpu.dynamic_rotate %20 by %c126_i32_15 dim 1 : vector<16x128xf32>, i32 -> vector<16x128xf32>
    %24 = arith.addf %22, %23 : vector<16x128xf32>
    %cst_16 = arith.constant 0.000000e+00 : f32
    %25 = vector.broadcast %cst_16 : f32 to vector<16x128xf32>
    %26 = arith.maximumf %24, %25 : vector<16x128xf32>
    %c125_i32 = arith.constant 125 : i32
    %27 = tpu.dynamic_rotate %26 by %c125_i32 dim 1 : vector<16x128xf32>, i32 -> vector<16x128xf32>
    %28 = tpu.concatenate %26, %27, %0 in 0 : vector<16x128xf32>, vector<16x128xf32>, vector<8x128xf32> -> vector<40x128xf32>
    %c32 = arith.constant 32 : index
    %c0_17 = arith.constant 0 : index
    %29 = vector.load %arg1[%c32, %c0_17] : memref<136x128xf32, #tpu.memory_space<vmem>>, vector<32x40xf32>
    %cst_18 = arith.constant dense<0.000000e+00> : vector<32x128xf32>
    %30 = tpu.matmul %29, %28, %cst_18 {dimension_numbers = #tpu.dot_dimension_numbers<[1], [0], [0], [1], [0, 0, 1, 1], [], []>} : vector<32x40xf32>, vector<40x128xf32>, vector<32x128xf32> -> vector<32x128xf32>
    %c125_i32_19 = arith.constant 125 : i32
    %31 = tpu.dynamic_rotate %30 by %c125_i32_19 dim 1 : vector<32x128xf32>, i32 -> vector<32x128xf32>
    %32 = arith.addf %30, %31 : vector<32x128xf32>
    %c122_i32 = arith.constant 122 : i32
    %33 = tpu.dynamic_rotate %30 by %c122_i32 dim 1 : vector<32x128xf32>, i32 -> vector<32x128xf32>
    %34 = arith.addf %32, %33 : vector<32x128xf32>
    %cst_20 = arith.constant 0.000000e+00 : f32
    %35 = vector.broadcast %cst_20 : f32 to vector<32x128xf32>
    %36 = arith.maximumf %34, %35 : vector<32x128xf32>
    %c119_i32 = arith.constant 119 : i32
    %37 = tpu.dynamic_rotate %36 by %c119_i32 dim 1 : vector<32x128xf32>, i32 -> vector<32x128xf32>
    %38 = tpu.concatenate %36, %37, %0 in 0 : vector<32x128xf32>, vector<32x128xf32>, vector<8x128xf32> -> vector<72x128xf32>
    %c64 = arith.constant 64 : index
    %c0_21 = arith.constant 0 : index
    %39 = vector.load %arg1[%c64, %c0_21] : memref<136x128xf32, #tpu.memory_space<vmem>>, vector<64x72xf32>
    %cst_22 = arith.constant dense<0.000000e+00> : vector<64x128xf32>
    %40 = tpu.matmul %39, %38, %cst_22 {dimension_numbers = #tpu.dot_dimension_numbers<[1], [0], [0], [1], [0, 0, 1, 1], [], []>} : vector<64x72xf32>, vector<72x128xf32>, vector<64x128xf32> -> vector<64x128xf32>
    %cst_23 = arith.constant 0.000000e+00 : f32
    %41 = vector.broadcast %cst_23 : f32 to vector<64x128xf32>
    %42 = arith.maximumf %40, %41 : vector<64x128xf32>
    %43 = tpu.concatenate %42, %0 in 0 : vector<64x128xf32>, vector<8x128xf32> -> vector<72x128xf32>
    %c128 = arith.constant 128 : index
    %c0_24 = arith.constant 0 : index
    %44 = vector.load %arg1[%c128, %c0_24] : memref<136x128xf32, #tpu.memory_space<vmem>>, vector<8x72xf32>
    %cst_25 = arith.constant dense<0.000000e+00> : vector<8x128xf32>
    %45 = tpu.matmul %44, %43, %cst_25 {dimension_numbers = #tpu.dot_dimension_numbers<[1], [0], [0], [1], [0, 0, 1, 1], [], []>} : vector<8x72xf32>, vector<72x128xf32>, vector<8x128xf32> -> vector<8x128xf32>
    %46 = arith.negf %45 : vector<8x128xf32>
    %47 = math.exp %46 : vector<8x128xf32>
    %cst_26 = arith.constant 1.000000e+00 : f32
    %48 = vector.broadcast %cst_26 : f32 to vector<8x128xf32>
    %49 = arith.addf %48, %47 : vector<8x128xf32>
    %50 = arith.divf %48, %49 : vector<8x128xf32>
    %c0_27 = arith.constant 0 : index
    %c0_28 = arith.constant 0 : index
    %51 = vector.load %arg2[%c0_27, %c0_28] : memref<8x128xf32, #tpu.memory_space<vmem>>, vector<8x128xf32>
    tpu.vector_store %arg2[%c0_27, %c0_28], %50 {strides = array<i32>} : memref<8x128xf32, #tpu.memory_space<vmem>>, vector<8x128xf32>,
    return
  }
}

</mosaic_0001>

<bundles_post_ra>
// kernel: cnn_forward.1
= control target key start
LH: loop header
LB: loop body
LE: loop exit
PB: predicated region body
PF: predicated region fallthrough
CT: control target
= control target key end

     0   :  { %7 = vsyncpa [#allocation3], 0  ;;  %s443_s12 = smov [#allocation2]   ;;  %s444_s14 = smov 128   ;;  %s507_s0 = inlined_call_operand.vmem [shape: f32[8,128], index: 0, kind: input, shape index: {}]   ;;  %s508_s1 = inlined_call_operand.hbm [shape: f32[136,128], index: 1, kind: input, shape index: {}]   ;;  %s509_s2 = inlined_call_operand.vmem [shape: f32[8,128], index: 2, kind: output, shape index: {}]  }
   0x1   :  { %s14_s11 = sshll.u32 %s508_s1, 4  ;;  %s16_s13 = sshll.u32 %s443_s12, 4  ;;  %s15_s11 = int_to_ptr.hbm [resolvable:$true] %s14_s11  ;;  %s17_s13 = int_to_ptr.vmem [resolvable:$true] %s16_s13 }
   0x2   :  { %s445_s15 = smov 8  }
   0x3   :  { %22 = dma.hbm_to_vmem [thread:$0]  %s15_s11, 2176, %s17_s13, [#allocation3], %s444_s14, %s444_s14, %s445_s15  }
   0x4   :  { %441 = dma.done.wait [#allocation3], 2176  }
   0x5   :  { %442 = vsyncadd [#allocation3], 4294965120  ;;  %v446_v0 = vmov 1.0   ;;  %v27_v1 = vld [vmem:[%s507_s0] sm:$0xff]  ;;  %s447_s17 = smov 126   ;;  %s448_s18 = smov 127  }
   0x6   :  { %49 = vmatpush.msra.mxu0 %v446_v0  ;;  %78 = vmatpush.msra.mxu3 %v446_v0  ;;  %v32_v4 = vld [vmem:[#allocation2] sm:$0xff]  ;;  %vm33_vm0 = vcmask 261120   ;;  %v62_v9 = vld [vmem:[#allocation2 + $0x8] sm:$0xff]  ;;  %v91_v14 = vld [vmem:[#allocation2 + $0x10] sm:$0xff]  ;;  %s449_s0 = smov 125   ;;  %vm144_vm1 = vcmask 326656  }
   0x7   :  { %111 = vmatpush.msra.mxu2 %v446_v0  ;;  %371 = vmatpush.msra.mxu1 %v446_v0  ;;  %v92_v15 = vld [vmem:[#allocation2 + $0x18] sm:$0xff]  ;;  %v140_v32 = vld [vmem:[#allocation2 + $0x20] sm:$0xff]  ;;  %v141_v33 = vld [vmem:[#allocation2 + $0x28] sm:$0xff]  ;;  %s450_s19 = smov 122   ;;  %s451_s20 = smov 119   ;;  %vm230_vm2 = vcmask 588800  }
   0x8   :  { %30 = vrot.lane.b32.xlu0 %v27_v1, %s447_s17  ;;  %v142_v34 = vld [vmem:[#allocation2 + $0x30] sm:$0xff]  ;;  %v143_v35 = vld [vmem:[#allocation2 + $0x38] sm:$0xff] }
  0x10   :  { %28 = vrot.lane.b32.xlu0 %v27_v1, %s448_s18 }
  0x7a   :  { %v31_v2 = vpop.permute.xlu0 %30 }
  0x7b   :  { %50 = vmatpush.msra.mxu0 %v31_v2 }
  0x82   :  { %v29_v3 = vpop.permute.xlu0 %28 }
  0x83   :  { %51 = vmatpush.msra.mxu0 %v29_v3 }
  0x85   :  { %52 = vmatpush.msra.mxu0 %v27_v1 }
  0x86   :  { %353 = vmatmul.msk.f32.vlgmr.msra.gmra.mxu0 %vm33_vm0, %v32_v4 }
  0x87   :  { %262 = vmatpush.msrb.mxu0 %v446_v0 }
 0x103   :  { %v54_v5 = vpop.f32.mrf.mxu0 }
 0x104   :  { %v57_v6 = vmax.f32 %v54_v5, 0.0  ;;  %v222_v5 = vld [vmem:[#allocation2 + $0x40] sm:$0xff] }
 0x106   :  { %60 = vrot.lane.b32.xlu1 %v57_v6, %s447_s17 }
 0x10e   :  { %58 = vrot.lane.b32.xlu1 %v57_v6, %s448_s18 }
 0x178   :  { %v61_v7 = vpop.permute.xlu1 %60 }
 0x179   :  { %79 = vmatpush.msra.mxu3 %v61_v7  ;;  %v225_v7 = vld [vmem:[#allocation2 + $0x58] sm:$0xff] }
 0x180   :  { %v59_v8 = vpop.permute.xlu1 %58 }
 0x181   :  { %80 = vmatpush.msra.mxu3 %v59_v8  ;;  %v223_v8 = vld [vmem:[#allocation2 + $0x48] sm:$0xff] }
 0x183   :  { %81 = vmatpush.msra.mxu3 %v57_v6  ;;  %v227_v6 = vld [vmem:[#allocation2 + $0x68] sm:$0xff] }
 0x184   :  { %354 = vmatmul.msk.f32.vlgmr.msra.gmra.mxu3 %vm33_vm0, %v62_v9  ;;  %v228_v9 = vld [vmem:[#allocation2 + $0x70] sm:$0xff] }
 0x185   :  { %168 = vmatpush.msrb.mxu3 %v446_v0 }
 0x207   :  { %v83_v10 = vpop.f32.mrf.mxu3 }
 0x208   :  { %v86_v11 = vmax.f32 %v83_v10, 0.0  ;;  %v226_v10 = vld [vmem:[#allocation2 + $0x60] sm:$0xff] }
 0x20a   :  { %89 = vrot.lane.b32.xlu2 %v86_v11, %s447_s17 }
 0x212   :  { %87 = vrot.lane.b32.xlu2 %v86_v11, %s448_s18 }
 0x264   :  { %v90_v12 = vpop.permute.xlu2 %89 }
 0x265   :  { %112 = vmatpush.msra.mxu2 %v90_v12  ;;  %v229_v12 = vld [vmem:[#allocation2 + $0x78] sm:$0xff] }
 0x26c   :  { %v88_v13 = vpop.permute.xlu2 %87 }
 0x26d   :  { %113 = vmatpush.msra.mxu2 %v88_v13 }
 0x26f   :  { %114 = vmatpush.msra.mxu2 %v86_v11  ;;  %v224_v11 = vld [vmem:[#allocation2 + $0x50] sm:$0xff] }
 0x270   :  { %355 = vmatmul.msk.f32.vlgmr.msra.gmra.mxu2 %vm33_vm0, %v91_v14 }
 0x271   :  { %372 = vmatpush.msrb.mxu2 %v446_v0 }
 0x278   :  { %356 = vmatmul.msk.f32.gmra.mxu2 %vm33_vm0, %v92_v15 }
 0x2f3   :  { %v116_v16 = vpop.f32.mrf.mxu2 }
 0x2f4   :  { %122 = vrot.lane.b32.xlu1 %v116_v16, %s448_s18 }
 0x2fb   :  { %v119_v17 = vpop.f32.mrf.mxu2 }
 0x2fc   :  { %130 = vrot.lane.b32.xlu2 %v119_v17, %s447_s17  ;;  %124 = vrot.lane.b32.xlu0 %v119_v17, %s448_s18 }
 0x304   :  { %128 = vrot.lane.b32.xlu0 %v116_v16, %s447_s17 }
 0x356   :  { %v131_v21 = vpop.permute.xlu2 %130 }
 0x366   :  { %v123_v20 = vpop.permute.xlu1 %122 }
 0x367   :  { %v126_v22 = vadd.f32 %v123_v20, %v116_v16 }
 0x36e   :  { %v125_v18 = vpop.permute.xlu0 %124 }
 0x36f   :  { %v127_v19 = vadd.f32 %v125_v18, %v119_v17 }
 0x371   :  { %v133_v23 = vadd.f32 %v131_v21, %v127_v19 }
 0x373   :  { %v135_v26 = vmax.f32 %v133_v23, 0.0 }
 0x376   :  { %v129_v24 = vpop.permute.xlu0 %128 }
 0x377   :  { %v132_v25 = vadd.f32 %v129_v24, %v126_v22 }
 0x379   :  { %v134_v27 = vmax.f32 %v132_v25, 0.0 }
 0x37b   :  { %v398_v28 = vpack.i.bf16 %v134_v27, %v135_v26 }
 0x37d   :  { %399 = vrot.lane.b32.xlu1 %v398_v28, %s449_s0  ;;  %v304_v28 = vld [vmem:[#allocation2 + $0x80] sm:$0xff] }
 0x3ef   :  { %v400_v29 = vpop.permute.xlu1 %399 }
 0x3f0   :  { %v401_v30 = vunpack.i.l.bf16 %v400_v29  ;;  %v402_v31 = vunpack.i.h.bf16 %v400_v29 }
 0x3f2   :  { %169 = vmatpush.msrb.mxu3 %v401_v30 }
 0x3f4   :  { %170 = vmatpush.msrb.mxu3 %v402_v31 }
 0x3f6   :  { %171 = vmatpush.msrb.mxu3 %v135_v26 }
 0x3f8   :  { %172 = vmatpush.msrb.mxu3 %v134_v27 }
 0x3f9   :  { %357 = vmatmul.msk.f32.vlgmr.msrb.gmra.mxu3 %vm144_vm1, %v140_v32 }
 0x401   :  { %358 = vmatmul.msk.f32.gmra.mxu3 %vm144_vm1, %v141_v33 }
 0x409   :  { %359 = vmatmul.msk.f32.gmra.mxu3 %vm144_vm1, %v142_v34 }
 0x411   :  { %360 = vmatmul.msk.f32.gmra.mxu3 %vm144_vm1, %v143_v35 }
 0x47c   :  { %v174_v36 = vpop.f32.mrf.mxu3 }
 0x484   :  { %v177_v37 = vpop.f32.mrf.mxu3 }
 0x485   :  { %188 = vrot.lane.b32.xlu2 %v177_v37, %s449_s0 }
 0x48c   :  { %v180_v38 = vpop.f32.mrf.mxu3 }
 0x48d   :  { %190 = vrot.lane.b32.xlu0 %v180_v38, %s449_s0 }
 0x494   :  { %v183_v39 = vpop.f32.mrf.mxu3 }
 0x495   :  { %202 = vrot.lane.b32.xlu0 %v180_v38, %s450_s19  ;;  %204 = vrot.lane.b32.xlu1 %v183_v39, %s450_s19 }
 0x496   :  { %192 = vrot.lane.b32.xlu2 %v183_v39, %s449_s0 }
 0x49d   :  { %198 = vrot.lane.b32.xlu0 %v174_v36, %s450_s19  ;;  %186 = vrot.lane.b32.xlu1 %v174_v36, %s449_s0 }
 0x49e   :  { %200 = vrot.lane.b32.xlu2 %v177_v37, %s450_s19 }
 0x4df   :  { %v189_v40 = vpop.permute.xlu2 %188 }
 0x4e0   :  { %v195_v53 = vadd.f32 %v189_v40, %v177_v37 }
 0x4f0   :  { %v193_v42 = vpop.permute.xlu2 %192 }
 0x4f1   :  { %v197_v43 = vadd.f32 %v193_v42, %v183_v39 }
 0x4f8   :  { %v201_v52 = vpop.permute.xlu2 %200 }
 0x4f9   :  { %v207_v55 = vadd.f32 %v201_v52, %v195_v53 }
 0x4fb   :  { %v211_v59 = vmax.f32 %v207_v55, 0.0 }
 0x4ff   :  { %v191_v41 = vpop.permute.xlu0 %190 }
 0x500   :  { %v196_v44 = vadd.f32 %v191_v41, %v180_v38 }
 0x507   :  { %v203_v45 = vpop.permute.xlu0 %202  ;;  %v205_v46 = vpop.permute.xlu1 %204 }
 0x508   :  { %v208_v47 = vadd.f32 %v203_v45, %v196_v44  ;;  %v209_v48 = vadd.f32 %v205_v46, %v197_v43 }
 0x50a   :  { %v212_v49 = vmax.f32 %v208_v47, 0.0  ;;  %v213_v50 = vmax.f32 %v209_v48, 0.0 }
 0x50c   :  { %v403_v51 = vpack.i.bf16 %v212_v49, %v213_v50 }
 0x50e   :  { %404 = vrot.lane.b32.xlu1 %v403_v51, %s451_s20 }
 0x50f   :  { %v187_v54 = vpop.permute.xlu1 %186  ;;  %v199_v57 = vpop.permute.xlu0 %198 }
 0x510   :  { %v194_v56 = vadd.f32 %v187_v54, %v174_v36 }
 0x512   :  { %v206_v58 = vadd.f32 %v199_v57, %v194_v56 }
 0x514   :  { %v210_v60 = vmax.f32 %v206_v58, 0.0 }
 0x516   :  { %v408_v61 = vpack.i.bf16 %v210_v60, %v211_v59 }
 0x518   :  { %409 = vrot.lane.b32.xlu2 %v408_v61, %s451_s20 }
 0x572   :  { %v410_v1 = vpop.permute.xlu2 %409 }
 0x573   :  { %v411_v3 = vunpack.i.l.bf16 %v410_v1  ;;  %v412_v4 = vunpack.i.h.bf16 %v410_v1 }
 0x580   :  { %v405_v62 = vpop.permute.xlu1 %404 }
 0x581   :  { %v406_v63 = vunpack.i.l.bf16 %v405_v62  ;;  %v407_v2 = vunpack.i.h.bf16 %v405_v62 }
 0x583   :  { %263 = vmatpush.msrb.mxu0 %v406_v63  ;;  %373 = vmatpush.msra.mxu1 %v406_v63 }
 0x584   :  { %374 = vmatpush.msrb.mxu2 %v406_v63 }
 0x585   :  { %264 = vmatpush.msrb.mxu0 %v407_v2  ;;  %375 = vmatpush.msra.mxu1 %v407_v2 }
 0x586   :  { %376 = vmatpush.msrb.mxu2 %v407_v2 }
 0x587   :  { %265 = vmatpush.msrb.mxu0 %v411_v3  ;;  %377 = vmatpush.msra.mxu1 %v411_v3 }
 0x588   :  { %378 = vmatpush.msrb.mxu2 %v411_v3 }
 0x589   :  { %266 = vmatpush.msrb.mxu0 %v412_v4  ;;  %379 = vmatpush.msra.mxu1 %v412_v4 }
 0x58a   :  { %380 = vmatpush.msrb.mxu2 %v412_v4 }
 0x58b   :  { %267 = vmatpush.msrb.mxu0 %v213_v50  ;;  %381 = vmatpush.msra.mxu1 %v213_v50 }
 0x58c   :  { %382 = vmatpush.msrb.mxu2 %v213_v50 }
 0x58d   :  { %268 = vmatpush.msrb.mxu0 %v212_v49  ;;  %383 = vmatpush.msra.mxu1 %v212_v49 }
 0x58e   :  { %384 = vmatpush.msrb.mxu2 %v212_v49 }
 0x58f   :  { %269 = vmatpush.msrb.mxu0 %v211_v59  ;;  %385 = vmatpush.msra.mxu1 %v211_v59 }
 0x590   :  { %386 = vmatpush.msrb.mxu2 %v211_v59 }
 0x591   :  { %270 = vmatpush.msrb.mxu0 %v210_v60  ;;  %387 = vmatpush.msra.mxu1 %v210_v60 }
 0x592   :  { %388 = vmatpush.msrb.mxu2 %v210_v60  ;;  %361 = vmatmul.msk.f32.vlgmr.msrb.gmra.mxu0 %vm230_vm2, %v222_v5 }
 0x593   :  { %366 = vmatmul.msk.f32.vlgmr.msrb.gmra.mxu2 %vm230_vm2, %v227_v6  ;;  %364 = vmatmul.msk.f32.vlgmr.msra.gmra.mxu1 %vm230_vm2, %v225_v7 }
 0x594   :  { %315 = vmatpush.msrb.mxu1 %v446_v0 }
 0x59a   :  { %362 = vmatmul.msk.f32.gmra.mxu0 %vm230_vm2, %v223_v8 }
 0x59b   :  { %367 = vmatmul.msk.f32.gmra.mxu2 %vm230_vm2, %v228_v9  ;;  %365 = vmatmul.msk.f32.gmra.mxu1 %vm230_vm2, %v226_v10 }
 0x5a2   :  { %363 = vmatmul.msk.f32.gmra.mxu0 %vm230_vm2, %v224_v11 }
 0x5a3   :  { %368 = vmatmul.msk.f32.gmra.mxu2 %vm230_vm2, %v229_v12 }
 0x60f   :  { %v272_v14 = vpop.f32.mrf.mxu0 }
 0x610   :  { %v281_v16 = vpop.f32.mrf.mxu1  ;;  %v296_v27 = vmax.f32 %v272_v14, 0.0 }
 0x611   :  { %v299_v24 = vmax.f32 %v281_v16, 0.0 }
 0x616   :  { %v287_v13 = vpop.f32.mrf.mxu2 }
 0x617   :  { %v275_v0 = vpop.f32.mrf.mxu0  ;;  %v301_v21 = vmax.f32 %v287_v13, 0.0 }
 0x618   :  { %v284_v19 = vpop.f32.mrf.mxu1  ;;  %v297_v26 = vmax.f32 %v275_v0, 0.0 }
 0x619   :  { %v300_v22 = vmax.f32 %v284_v19, 0.0 }
 0x61e   :  { %v290_v15 = vpop.f32.mrf.mxu2 }
 0x61f   :  { %v302_v20 = vmax.f32 %v290_v15, 0.0  ;;  %v278_v23 = vpop.f32.mrf.mxu0 }
 0x620   :  { %v298_v25 = vmax.f32 %v278_v23, 0.0 }
 0x626   :  { %v293_v17 = vpop.f32.mrf.mxu2 }
 0x627   :  { %v303_v18 = vmax.f32 %v293_v17, 0.0 }
 0x629   :  { %316 = vmatpush.msrb.mxu1 %v303_v18 }
 0x62b   :  { %317 = vmatpush.msrb.mxu1 %v302_v20 }
 0x62d   :  { %318 = vmatpush.msrb.mxu1 %v301_v21 }
 0x62f   :  { %319 = vmatpush.msrb.mxu1 %v300_v22 }
 0x631   :  { %320 = vmatpush.msrb.mxu1 %v299_v24 }
 0x633   :  { %321 = vmatpush.msrb.mxu1 %v298_v25 }
 0x635   :  { %322 = vmatpush.msrb.mxu1 %v297_v26 }
 0x637   :  { %323 = vmatpush.msrb.mxu1 %v296_v27 }
 0x638   :  { %369 = vmatmul.msk.f32.vlgmr.msrb.gmra.mxu1 %vm230_vm2, %v304_v28 }
 0x6b5   :  { %v325_v29 = vpop.f32.mrf.mxu1 }
 0x6b6   :  { %v370_v30 = vmul.f32 -1.442695, %v325_v29 }
 0x6b8   :  { %413 = vpow2.f32 %v370_v30 }
 0x6be   :  { %v414_v31 = vpop.eup %413 }
 0x6bf   :  { %v331_v32 = vadd.f32 1.0, %v414_v31 }
 0x6c1   :  { %415 = vrcp.f32 %v331_v32  ;;  %v343_v36 = vand.u32 2147483648, %v331_v32  ;;  %v341_v38 = vand.u32 2147483647, %v331_v32  ;;  %vm337_vm4 = vweird.f32 %v331_v32 }
 0x6c3   :  { %v344_v40 = vor.u32 1.1754944e-38, %v343_v36  ;;  %vm342_vm6 = vcmp.eq.f32.partialorder %v341_v38, 8.507059e+37 }
 0x6c7   :  { %v416_v33 = vpop.eup %415 }
 0x6c8   :  { %v333_v34 = vmul.f32 %v416_v33, %v331_v32  ;;  %vm338_vm3 = vweird.f32 %v416_v33 }
 0x6c9   :  { %vm339_vm5 = vmor %vm337_vm4, %vm338_vm3 }
 0x6ca   :  { %v334_v35 = vsub.f32 1.0, %v333_v34 }
 0x6cc   :  { %v335_v37 = vmul.f32 %v416_v33, %v334_v35 }
 0x6ce   :  { %v336_v39 = vadd.f32 %v416_v33, %v335_v37 }
 0x6d0   :  { %v340_v41 = vsel %vm339_vm5, %v416_v33, %v336_v39 }
 0x6d1   :  { %v345_v42 = vsel %vm342_vm6, %v344_v40, %v340_v41 }
 0x6d2   :  { %347 = vst [vmem:[%s509_s2] sm:$0xff] %v345_v42 }
 0x6d3   :  { %352 = vsyncpa [#allocation3], 1 }

</bundles_post_ra>
